<compile_context>
chip_gen: v5e
topology: v5e:2x2
jax: 0.10.0
libtpu: 0.0.40
codegen_flags: <defaults>
</compile_context>

<pallas_src>
import jax
import jax.numpy as jnp
from jax.experimental import pallas as pl
from jax.experimental.pallas import tpu as pltpu

H1, H2 = 256, 128          # hidden sizes from the PyTorch module
EMB = 64                   # embedding_dim default
EPS = 1e-5                 # BatchNorm1d default eps
BM_CAP = 1024              # max rows per grid step (VMEM-safe on v5e default limit)


def _round_up(x, m):
    return ((x + m - 1) // m) * m


# ----------------------------- kernel ---------------------------------------

def two_tower_kernel(u_ref, e_ref, w1u_ref, w1e_ref, b1_ref,
                     w2_ref, b2_ref, w3_ref, b3_ref, out_ref):
    # Inputs arrive as raw f32 blocks (no host-side cast/pad pass); cast to
    # bf16 for the MXU.  Rows in an overhanging last block are undefined but
    # only affect output columns that are masked / discarded.
    u = u_ref[...].astype(jnp.bfloat16)                       # (bm, Du)
    e = e_ref[...].astype(jnp.bfloat16)                       # (bm, De)

    # Layer 1: two tiny-K matmuls; concatenating the 256-wide results at a
    # 128-aligned lane boundary is free (pure vreg placement).
    h1u = jnp.dot(u, w1u_ref[...], preferred_element_type=jnp.float32)
    h1e = jnp.dot(e, w1e_ref[...], preferred_element_type=jnp.float32)
    h1 = jnp.concatenate([h1u, h1e], axis=-1) + b1_ref[...]    # (bm, 2*H1)
    h1 = jnp.maximum(h1, 0.0).astype(jnp.bfloat16)

    # Layers 2 & 3: both towers fused via block-diagonal weights.
    h2 = jnp.dot(h1, w2_ref[...], preferred_element_type=jnp.float32) + b2_ref[...]
    h2 = jnp.maximum(h2, 0.0).astype(jnp.bfloat16)             # (bm, 2*H2)
    emb = jnp.dot(h2, w3_ref[...], preferred_element_type=jnp.float32) + b3_ref[...]

    # emb = [user_emb | event_emb], each zero-padded to 128 lanes, so the
    # slices below sit on free 128-lane boundaries and padded columns
    # contribute exactly 0 to the similarity.
    ep = emb.shape[-1] // 2
    sim = jnp.sum(emb[:, :ep] * emb[:, ep:], axis=-1)          # (bm,) f32
    out_ref[...] = sim.reshape(1, -1)                           # lane-dense (1, bm) row


# ----------------------------- host-side prep --------------------------------

def fold_bn_into_linear(params):
    """[W1,b1,s1,t1, W2,b2,s2,t2, W3,b3,s3,t3] -> [W1,b1, W2,b2, W3,b3] (f32).

    Module order is Linear -> ReLU -> BatchNorm, so BN1/BN2 fold into the
    NEXT linear:
        (relu(x@W1+b1)*s1 + t1) @ W2 + b2
      == relu(x@W1+b1) @ (diag(s1)@W2) + (t1@W2 + b2)
    and the trailing BN3 folds directly into W3/b3.
    """
    W1, b1, s1, t1, W2, b2, s2, t2, W3, b3, s3, t3 = params
    W2f = W2 * s1.T
    b2f = b2 + t1 @ W2
    W3f = (W3 * s2.T) * s3
    b3f = (b3 + t2 @ W3) * s3 + t3
    return [W1, b1, W2f, b2f, W3f, b3f]


def _block_diag(a, b):
    za = jnp.zeros((a.shape[0], b.shape[1]), a.dtype)
    zb = jnp.zeros((b.shape[0], a.shape[1]), b.dtype)
    return jnp.concatenate(
        [jnp.concatenate([a, za], axis=1),
         jnp.concatenate([zb, b], axis=1)], axis=0)


def build_fused_params(user_params, event_params):
    """Fold BN, zero-pad EMB -> 128 columns, block-diagonal-fuse both towers.

    Returns 7 arrays: W1u, W1e (bf16), b1_cat (f32 1x2H1), W2_blk (bf16
    2H1x2H2), b2_cat (f32 1x2H2), W3_blk (bf16 2H2x2*EMB_pad),
    b3_cat (f32 1x2*EMB_pad).
    """
    uW1, ub1, uW2, ub2, uW3, ub3 = fold_bn_into_linear(user_params)
    eW1, eb1, eW2, eb2, eW3, eb3 = fold_bn_into_linear(event_params)
    emb_pad = _round_up(uW3.shape[1], 128)
    pu = emb_pad - uW3.shape[1]
    pe = emb_pad - eW3.shape[1]
    uW3p = jnp.pad(uW3, ((0, 0), (0, pu)))
    ub3p = jnp.pad(ub3, ((0, 0), (0, pu)))
    eW3p = jnp.pad(eW3, ((0, 0), (0, pe)))
    eb3p = jnp.pad(eb3, ((0, 0), (0, pe)))
    return [
        uW1.astype(jnp.bfloat16),
        eW1.astype(jnp.bfloat16),
        jnp.concatenate([ub1, eb1], axis=1).astype(jnp.float32),
        _block_diag(uW2, eW2).astype(jnp.bfloat16),
        jnp.concatenate([ub2, eb2], axis=1).astype(jnp.float32),
        _block_diag(uW3p, eW3p).astype(jnp.bfloat16),
        jnp.concatenate([ub3p, eb3p], axis=1).astype(jnp.float32),
    ]


def _pick_bm(B):
    if B <= 256:
        return B          # one step; the whole (tiny) batch is a single full block
    # >=2 steps so ("parallel",) can shard across v7x's two TensorCores; tiles
    # aligned to 256 (MXU-M on v6e/v7x, multiple of v5e's 128); capped at
    # BM_CAP so VMEM stays far below v5e's 16 MiB scoped default.
    steps = max(2, pl.cdiv(B, BM_CAP))
    return min(BM_CAP, _round_up(pl.cdiv(B, steps), 256))


def two_tower_forward(user_x, event_x, user_params, event_params, bm=None):
    """user_params / event_params: 12 raw arrays each (W, b, BN-scale, BN-shift) x 3."""
    B, Du = user_x.shape
    Be, De = event_x.shape
    assert Be == B

    if bm is None:
        bm = _pick_bm(B)
    else:
        bm = _round_up(max(int(bm), 1), 128)
    if bm >= B:
        bm = B                      # single full-array block: no alignment constraints
    grid = pl.cdiv(B, bm)           # overhanging last block is masked by Pallas

    fused = build_fused_params(user_params, event_params)

    def const_spec(p):              # constant block index -> fetched once, stays resident
        return pl.BlockSpec(p.shape, lambda i: (0, 0))

    in_specs = (
        [pl.BlockSpec((bm, Du), lambda i: (i, 0)),
         pl.BlockSpec((bm, De), lambda i: (i, 0))]
        + [const_spec(p) for p in fused]
    )
    # Lane-dense row output: block (1, bm) of a (1, B) result.
    out_spec = pl.BlockSpec((1, bm), lambda i: (0, i))

    out = pl.pallas_call(
        two_tower_kernel,
        out_shape=jax.ShapeDtypeStruct((1, B), jnp.float32),
        grid_spec=pltpu.PrefetchScalarGridSpec(
            num_scalar_prefetch=0,
            grid=(grid,),
            in_specs=in_specs,
            out_specs=out_spec,
        ),
        compiler_params=pltpu.CompilerParams(
            dimension_semantics=("parallel",)),
    )(user_x, event_x, *fused)
    return out[0]                   # (B,) similarity, matching torch.sum(..., dim=1)


# ----------------------------- test harness ----------------------------------

def make_tower_params(key, in_dim, emb_dim=EMB):
    """nn.Linear-style init plus non-trivial eval-mode BatchNorm stats."""
    dims = [(in_dim, H1), (H1, H2), (H2, emb_dim)]
    params = []
    for (din, dout) in dims:
        key, kw, kb, kg, kbe, km, kv = jax.random.split(key, 7)
        bound = 1.0 / float(din) ** 0.5
        W = jax.random.uniform(kw, (din, dout), jnp.float32, -bound, bound)
        b = jax.random.uniform(kb, (1, dout), jnp.float32, -bound, bound)
        gamma = jax.random.uniform(kg, (1, dout), jnp.float32, 0.5, 1.5)
        beta = 0.1 * jax.random.normal(kbe, (1, dout), jnp.float32)
        rmean = 0.1 * jax.random.normal(km, (1, dout), jnp.float32)
        rvar = jax.random.uniform(kv, (1, dout), jnp.float32, 0.5, 1.5)
        s = gamma / jnp.sqrt(rvar + EPS)
        t = beta - rmean * s
        params += [W, b, s, t]
    return params, key


def _tower_ref_f32(x, p):
    """Full-precision, un-folded eval-mode reference (mirrors the PyTorch module)."""
    W1, b1, s1, t1, W2, b2, s2, t2, W3, b3, s3, t3 = p
    h = jnp.maximum(x @ W1 + b1, 0.0) * s1 + t1
    h = jnp.maximum(h @ W2 + b2, 0.0) * s2 + t2
    return (h @ W3 + b3) * s3 + t3


def _ref_fused_bf16(user_x, event_x, fused):
    """Plain-JAX reference with the same folded/fused/bf16 numerics as the kernel."""
    w1u, w1e, b1, w2, b2, w3, b3 = fused
    u = user_x.astype(jnp.bfloat16)
    e = event_x.astype(jnp.bfloat16)
    h1 = jnp.concatenate(
        [jnp.dot(u, w1u, preferred_element_type=jnp.float32),
         jnp.dot(e, w1e, preferred_element_type=jnp.float32)], axis=-1) + b1
    h1 = jnp.maximum(h1, 0.0).astype(jnp.bfloat16)
    h2 = jnp.dot(h1, w2, preferred_element_type=jnp.float32) + b2
    h2 = jnp.maximum(h2, 0.0).astype(jnp.bfloat16)
    emb = jnp.dot(h2, w3, preferred_element_type=jnp.float32) + b3
    ep = emb.shape[-1] // 2
    return jnp.sum(emb[:, :ep] * emb[:, ep:], axis=-1)


if __name__ == "__main__":
    key = jax.random.PRNGKey(0)
    Du, De = 32, 48
    user_params, key = make_tower_params(key, Du)
    event_params, key = make_tower_params(key, De)
    fused = build_fused_params(user_params, event_params)

    # B=16: tiny single-block path.  B=300: multi-step grid + ragged masked tail.
    for B in (16, 300):
        key, ku, ke = jax.random.split(key, 3)
        user_x = jax.random.normal(ku, (B, Du), jnp.float32)
        event_x = jax.random.normal(ke, (B, De), jnp.float32)

        sim = two_tower_forward(user_x, event_x, user_params, event_params)
        sim = jax.block_until_ready(sim)
        assert sim.shape == (B,)

        # Tight check: plain-JAX reference with identical folded/fused/bf16 math.
        ref_matched = _ref_fused_bf16(user_x, event_x, fused)
        assert jnp.allclose(sim, ref_matched, atol=5e-2, rtol=5e-2), \
            float(jnp.max(jnp.abs(sim - ref_matched)))

        # Loose check: full-precision un-folded eval-mode semantics (bf16 tolerance).
        ref_f32 = jnp.sum(_tower_ref_f32(user_x, user_params) *
                          _tower_ref_f32(event_x, event_params), axis=1)
        assert jnp.allclose(sim, ref_f32, atol=0.25, rtol=0.05), \
            float(jnp.max(jnp.abs(sim - ref_f32)))

    print("KERNEL_OK")
</pallas_src>

<mosaic_0001>
module attributes {stable_mosaic.version = 11 : i64} {
  func.func @two_tower_kernel(%arg0: i32, %arg1: memref<16x32xf32, #tpu.memory_space<vmem>>, %arg2: memref<16x48xf32, #tpu.memory_space<vmem>>, %arg3: memref<32x256xbf16, #tpu.memory_space<vmem>>, %arg4: memref<48x256xbf16, #tpu.memory_space<vmem>>, %arg5: memref<1x512xf32, #tpu.memory_space<vmem>>, %arg6: memref<512x256xbf16, #tpu.memory_space<vmem>>, %arg7: memref<1x256xf32, #tpu.memory_space<vmem>>, %arg8: memref<256x256xbf16, #tpu.memory_space<vmem>>, %arg9: memref<1x256xf32, #tpu.memory_space<vmem>>, %arg10: memref<1x16xf32, #tpu.memory_space<vmem>>) attributes {dimension_semantics = [#tpu.dimension_semantics<parallel>], iteration_bounds = array<i64: 1>, scalar_prefetch = 0 : i64, scratch_operands = 0 : i64, tpu.core_type = #tpu.core_type<tc>, window_params = [{transform_indices = @transform_0, window_bounds = array<i64: 16, 32>}, {transform_indices = @transform_1, window_bounds = array<i64: 16, 48>}, {pipeline_mode = #tpu.pipeline_mode<synchronous>, transform_indices = @transform_2, window_bounds = array<i64: 32, 256>}, {pipeline_mode = #tpu.pipeline_mode<synchronous>, transform_indices = @transform_3, window_bounds = array<i64: 48, 256>}, {pipeline_mode = #tpu.pipeline_mode<synchronous>, transform_indices = @transform_4, window_bounds = array<i64: 1, 512>}, {pipeline_mode = #tpu.pipeline_mode<synchronous>, transform_indices = @transform_5, window_bounds = array<i64: 512, 256>}, {pipeline_mode = #tpu.pipeline_mode<synchronous>, transform_indices = @transform_6, window_bounds = array<i64: 1, 256>}, {pipeline_mode = #tpu.pipeline_mode<synchronous>, transform_indices = @transform_7, window_bounds = array<i64: 256, 256>}, {pipeline_mode = #tpu.pipeline_mode<synchronous>, transform_indices = @transform_8, window_bounds = array<i64: 1, 256>}, {transform_indices = @transform_9, window_bounds = array<i64: 1, 16>}]} {
    %c0 = arith.constant 0 : index
    %c0_0 = arith.constant 0 : index
    %0 = vector.load %arg1[%c0, %c0_0] : memref<16x32xf32, #tpu.memory_space<vmem>>, vector<16x32xf32>
    %1 = arith.truncf %0 : vector<16x32xf32> to vector<16x32xbf16>
    %c0_1 = arith.constant 0 : index
    %c0_2 = arith.constant 0 : index
    %2 = vector.load %arg2[%c0_1, %c0_2] : memref<16x48xf32, #tpu.memory_space<vmem>>, vector<16x48xf32>
    %3 = arith.truncf %2 : vector<16x48xf32> to vector<16x48xbf16>
    %c0_3 = arith.constant 0 : index
    %c0_4 = arith.constant 0 : index
    %4 = vector.load %arg3[%c0_3, %c0_4] : memref<32x256xbf16, #tpu.memory_space<vmem>>, vector<32x256xbf16>
    %cst = arith.constant dense<0.000000e+00> : vector<16x256xf32>
    %5 = tpu.matmul %1, %4, %cst {dimension_numbers = #tpu.dot_dimension_numbers<[1], [0], [0], [1], [0, 0, 1, 1], [], []>} : vector<16x32xbf16>, vector<32x256xbf16>, vector<16x256xf32> -> vector<16x256xf32>
    %c0_5 = arith.constant 0 : index
    %c0_6 = arith.constant 0 : index
    %6 = vector.load %arg4[%c0_5, %c0_6] : memref<48x256xbf16, #tpu.memory_space<vmem>>, vector<48x256xbf16>
    %cst_7 = arith.constant dense<0.000000e+00> : vector<16x256xf32>
    %7 = tpu.matmul %3, %6, %cst_7 {dimension_numbers = #tpu.dot_dimension_numbers<[1], [0], [0], [1], [0, 0, 1, 1], [], []>} : vector<16x48xbf16>, vector<48x256xbf16>, vector<16x256xf32> -> vector<16x256xf32>
    %8 = tpu.concatenate %5, %7 in 1 : vector<16x256xf32>, vector<16x256xf32> -> vector<16x512xf32>
    %c0_8 = arith.constant 0 : index
    %c0_9 = arith.constant 0 : index
    %9 = vector.load %arg5[%c0_8, %c0_9] : memref<1x512xf32, #tpu.memory_space<vmem>>, vector<1x512xf32>
    %10 = vector.broadcast %9 : vector<1x512xf32> to vector<16x512xf32>
    %11 = arith.addf %8, %10 : vector<16x512xf32>
    %cst_10 = arith.constant 0.000000e+00 : f32
    %12 = vector.broadcast %cst_10 : f32 to vector<16x512xf32>
    %13 = arith.maximumf %11, %12 : vector<16x512xf32>
    %14 = arith.truncf %13 : vector<16x512xf32> to vector<16x512xbf16>
    %c0_11 = arith.constant 0 : index
    %c0_12 = arith.constant 0 : index
    %15 = vector.load %arg6[%c0_11, %c0_12] : memref<512x256xbf16, #tpu.memory_space<vmem>>, vector<512x256xbf16>
    %cst_13 = arith.constant dense<0.000000e+00> : vector<16x256xf32>
    %16 = tpu.matmul %14, %15, %cst_13 {dimension_numbers = #tpu.dot_dimension_numbers<[1], [0], [0], [1], [0, 0, 1, 1], [], []>} : vector<16x512xbf16>, vector<512x256xbf16>, vector<16x256xf32> -> vector<16x256xf32>
    %c0_14 = arith.constant 0 : index
    %c0_15 = arith.constant 0 : index
    %17 = vector.load %arg7[%c0_14, %c0_15] : memref<1x256xf32, #tpu.memory_space<vmem>>, vector<1x256xf32>
    %18 = vector.broadcast %17 : vector<1x256xf32> to vector<16x256xf32>
    %19 = arith.addf %16, %18 : vector<16x256xf32>
    %cst_16 = arith.constant 0.000000e+00 : f32
    %20 = vector.broadcast %cst_16 : f32 to vector<16x256xf32>
    %21 = arith.maximumf %19, %20 : vector<16x256xf32>
    %22 = arith.truncf %21 : vector<16x256xf32> to vector<16x256xbf16>
    %c0_17 = arith.constant 0 : index
    %c0_18 = arith.constant 0 : index
    %23 = vector.load %arg8[%c0_17, %c0_18] : memref<256x256xbf16, #tpu.memory_space<vmem>>, vector<256x256xbf16>
    %cst_19 = arith.constant dense<0.000000e+00> : vector<16x256xf32>
    %24 = tpu.matmul %22, %23, %cst_19 {dimension_numbers = #tpu.dot_dimension_numbers<[1], [0], [0], [1], [0, 0, 1, 1], [], []>} : vector<16x256xbf16>, vector<256x256xbf16>, vector<16x256xf32> -> vector<16x256xf32>
    %c0_20 = arith.constant 0 : index
    %c0_21 = arith.constant 0 : index
    %25 = vector.load %arg9[%c0_20, %c0_21] : memref<1x256xf32, #tpu.memory_space<vmem>>, vector<1x256xf32>
    %26 = vector.broadcast %25 : vector<1x256xf32> to vector<16x256xf32>
    %27 = arith.addf %24, %26 : vector<16x256xf32>
    %28 = vector.extract_strided_slice %27 {offsets = [0, 0], sizes = [16, 128], strides = [1, 1]} : vector<16x256xf32> to vector<16x128xf32>
    %29 = vector.extract_strided_slice %27 {offsets = [0, 128], sizes = [16, 128], strides = [1, 1]} : vector<16x256xf32> to vector<16x128xf32>
    %30 = arith.mulf %28, %29 : vector<16x128xf32>
    %cst_22 = arith.constant dense<0.000000e+00> : vector<16xf32>
    %31 = vector.multi_reduction <add>, %30, %cst_22 [1] : vector<16x128xf32> to vector<16xf32>
    %32 = vector.shape_cast %31 : vector<16xf32> to vector<1x16xf32>
    %c0_23 = arith.constant 0 : index
    %c0_24 = arith.constant 0 : index
    %33 = vector.load %arg10[%c0_23, %c0_24] : memref<1x16xf32, #tpu.memory_space<vmem>>, vector<1x16xf32>
    tpu.vector_store %arg10[%c0_23, %c0_24], %32 {strides = array<i32>} : memref<1x16xf32, #tpu.memory_space<vmem>>, vector<1x16xf32>,
    return
  }
  func.func @transform_0(%arg0: i32) -> (i32, i32) {
    %c0_i32 = arith.constant 0 : i32
    %c0_i32_0 = arith.constant 0 : i32
    return %arg0, %c0_i32 : i32, i32
  }
  func.func @transform_1(%arg0: i32) -> (i32, i32) {
    %c0_i32 = arith.constant 0 : i32
    %c0_i32_0 = arith.constant 0 : i32
    return %arg0, %c0_i32 : i32, i32
  }
  func.func @transform_2(%arg0: i32) -> (i32, i32) {
    %c0_i32 = arith.constant 0 : i32
    %c0_i32_0 = arith.constant 0 : i32
    %c0_i32_1 = arith.constant 0 : i32
    return %c0_i32, %c0_i32_0 : i32, i32
  }
  func.func @transform_3(%arg0: i32) -> (i32, i32) {
    %c0_i32 = arith.constant 0 : i32
    %c0_i32_0 = arith.constant 0 : i32
    %c0_i32_1 = arith.constant 0 : i32
    return %c0_i32, %c0_i32_0 : i32, i32
  }
  func.func @transform_4(%arg0: i32) -> (i32, i32) {
    %c0_i32 = arith.constant 0 : i32
    %c0_i32_0 = arith.constant 0 : i32
    %c0_i32_1 = arith.constant 0 : i32
    return %c0_i32, %c0_i32_0 : i32, i32
  }
  func.func @transform_5(%arg0: i32) -> (i32, i32) {
    %c0_i32 = arith.constant 0 : i32
    %c0_i32_0 = arith.constant 0 : i32
    %c0_i32_1 = arith.constant 0 : i32
    return %c0_i32, %c0_i32_0 : i32, i32
  }
  func.func @transform_6(%arg0: i32) -> (i32, i32) {
    %c0_i32 = arith.constant 0 : i32
    %c0_i32_0 = arith.constant 0 : i32
    %c0_i32_1 = arith.constant 0 : i32
    return %c0_i32, %c0_i32_0 : i32, i32
  }
  func.func @transform_7(%arg0: i32) -> (i32, i32) {
    %c0_i32 = arith.constant 0 : i32
    %c0_i32_0 = arith.constant 0 : i32
    %c0_i32_1 = arith.constant 0 : i32
    return %c0_i32, %c0_i32_0 : i32, i32
  }
  func.func @transform_8(%arg0: i32) -> (i32, i32) {
    %c0_i32 = arith.constant 0 : i32
    %c0_i32_0 = arith.constant 0 : i32
    %c0_i32_1 = arith.constant 0 : i32
    return %c0_i32, %c0_i32_0 : i32, i32
  }
  func.func @transform_9(%arg0: i32) -> (i32, i32) {
    %c0_i32 = arith.constant 0 : i32
    %c0_i32_0 = arith.constant 0 : i32
    return %c0_i32, %arg0 : i32, i32
  }
}

</mosaic_0001>

<bundles_post_ra>
// kernel: tpu_custom_call.1
= control target key start
LH: loop header
LB: loop body
LE: loop exit
PB: predicated region body
PF: predicated region fallthrough
CT: control target
= control target key end

     0   :  { %14 = vsyncpa [#allocation3], 0  ;;  %s1959_s0 = inlined_call_operand.hbm [shape: f32[16,32], index: 0, kind: input, shape index: {}]   ;;  %s1960_s1 = inlined_call_operand.hbm [shape: f32[16,48], index: 1, kind: input, shape index: {}]   ;;  %s1961_s2 = inlined_call_operand.hbm [shape: bf16[32,256], index: 2, kind: input, shape index: {}]   ;;  %s1962_s3 = inlined_call_operand.hbm [shape: bf16[48,256], index: 3, kind: input, shape index: {}]   ;;  %s1963_s4 = inlined_call_operand.hbm [shape: f32[1,512], index: 4, kind: input, shape index: {}]   ;;  %s1964_s5 = inlined_call_operand.hbm [shape: bf16[512,256], index: 5, kind: input, shape index: {}]   ;;  %s1965_s6 = inlined_call_operand.vmem [shape: f32[1,256], index: 6, kind: input, shape index: {}]   ;;  %s1966_s7 = inlined_call_operand.hbm [shape: bf16[256,256], index: 7, kind: input, shape index: {}]   ;;  %s1967_s8 = inlined_call_operand.vmem [shape: f32[1,256], index: 8, kind: input, shape index: {}]   ;;  %s1968_s9 = inlined_call_operand.hbm [shape: f32[1,16], index: 9, kind: output, shape index: {}]  }
   0x1   :  { %15 = vsyncpa [#allocation6], 0 }
   0x2   :  { %16 = vsyncpa [#allocation9], 0 }
   0x3   :  { %17 = vsyncpa [#allocation12], 0 }
   0x4   :  { %18 = vsyncpa [#allocation4], 0  ;;  %s36_s11 = sshll.u32 %s1960_s1, 4  ;;  %s1847_s12 = smov [#allocation5]   ;;  %s37_s11 = int_to_ptr.hbm [resolvable:$true] %s36_s11 }
   0x5   :  { %s38_s13 = sshll.u32 %s1847_s12, 4  ;;  %s62_s16 = sshll.u32 %s1962_s3, 4  ;;  %s39_s13 = int_to_ptr.vmem [resolvable:$true] %s38_s13  ;;  %s63_s16 = int_to_ptr.hbm [resolvable:$true] %s62_s16 }
   0x6   :  { %s1848_s17 = smov 128   ;;  %s1849_s18 = smov 8  }
   0x7   :  { %44 = dma.hbm_to_vmem [thread:$0]  %s37_s11, 256, %s39_s13, [#allocation6], %s1848_s17, %s1848_s17, %s1849_s18  }
   0x8   :  { %s1850_s19 = smov [#allocation8]   ;;  %s86_s1 = sshll.u32 %s1964_s5, 4  ;;  %s87_s1 = int_to_ptr.hbm [resolvable:$true] %s86_s1 }
   0x9   :  { %s64_s20 = sshll.u32 %s1850_s19, 4  ;;  %s23_s24 = sshll.u32 %s1959_s0, 4  ;;  %s65_s20 = int_to_ptr.vmem [resolvable:$true] %s64_s20  ;;  %s24_s24 = int_to_ptr.hbm [resolvable:$true] %s23_s24 }
   0xa   :  { %70 = dma.hbm_to_vmem [thread:$0]  %s63_s16, 768, %s65_s20, [#allocation9], %s1848_s17, %s1848_s17, %s1849_s18  }
   0xb   :  { %s1851_s25 = smov [#allocation11]   ;;  %s1852_s27 = smov [#allocation2]  }
   0xc   :  { %s88_s26 = sshll.u32 %s1851_s25, 4  ;;  %s25_s5 = sshll.u32 %s1852_s27, 4  ;;  %s89_s26 = int_to_ptr.vmem [resolvable:$true] %s88_s26  ;;  %s26_s5 = int_to_ptr.vmem [resolvable:$true] %s25_s5 }
   0xd   :  { %94 = dma.hbm_to_vmem [thread:$0]  %s87_s1, 8192, %s89_s26, [#allocation12], %s1848_s17, %s1848_s17, %s1849_s18  }
   0xe   :  { %s49_s30 = sshll.u32 %s1961_s2, 4  ;;  %s76_s11 = sshll.u32 %s1963_s4, 4  ;;  %s50_s30 = int_to_ptr.hbm [resolvable:$true] %s49_s30  ;;  %s77_s11 = int_to_ptr.hbm [resolvable:$true] %s76_s11 }
   0xf   :  { %31 = dma.hbm_to_vmem [thread:$0]  %s24_s24, 256, %s26_s5, [#allocation3], %s1848_s17, %s1848_s17, %s1849_s18  }
  0x10   :  { %s1853_s12 = smov [#allocation7]   ;;  %s1854_s14 = smov [#allocation10]  }
  0x11   :  { %s51_s13 = sshll.u32 %s1853_s12, 4  ;;  %s78_s2 = sshll.u32 %s1854_s14, 4  ;;  %s52_s13 = int_to_ptr.vmem [resolvable:$true] %s51_s13  ;;  %s79_s2 = int_to_ptr.vmem [resolvable:$true] %s78_s2 }
  0x12   :  { %57 = dma.hbm_to_vmem [thread:$0]  %s50_s30, 512, %s52_s13, [#allocation6], %s1848_s17, %s1848_s17, %s1849_s18  }
  0x13   :  { %s101_s19 = sshll.u32 %s1966_s7, 4  ;;  %s1855_s20 = smov [#allocation13]   ;;  %s102_s19 = int_to_ptr.hbm [resolvable:$true] %s101_s19 }
  0x14   :  { %81 = dma.hbm_to_vmem [thread:$0]  %s77_s11, 64, %s79_s2, [#allocation9]  }
  0x15   :  { %s103_s21 = sshll.u32 %s1855_s20, 4  ;;  %s104_s21 = int_to_ptr.vmem [resolvable:$true] %s103_s21 }
  0x16   :  { %109 = dma.hbm_to_vmem [thread:$0]  %s102_s19, 4096, %s104_s21, [#allocation12], %s1848_s17, %s1848_s17, %s1849_s18  }
  0x17   :  { %1837 = dma.done.wait [#allocation3], 256  }
  0x18   :  { %1838 = vsyncadd [#allocation3], 4294967040 }
  0x19   :  { %1839 = dma.done.wait [#allocation6], 768  }
  0x1a   :  { %1840 = vsyncadd [#allocation6], 4294966528 }
  0x1b   :  { %1841 = dma.done.wait [#allocation9], 832  }
  0x1c   :  { %1842 = vsyncadd [#allocation9], 4294966464 }
  0x1d   :  { %1843 = dma.done.wait [#allocation12], 12288  }
  0x1e   :  { %1844 = vsyncadd [#allocation12], 4294955008  ;;  %v1111_v0 = vld [vmem:[#allocation7 + $0x10] sm:$0xf]  ;;  %v1532_v1 = vld [vmem:[#allocation7 + $0x14] sm:$0xf0] }
  0x1f   :  { %v1531_v2 = vld [vmem:[#allocation7 + $0x14] sm:$0xf]  ;;  %v1112_v3 = vor.u32 %v1532_v1, %v1111_v0  ;;  %v1113_v4 = vld [vmem:[#allocation7 + $0x18] sm:$0xf0]  ;;  %v1137_v5 = vld [vmem:[#allocation8 + $0x20] sm:$0xf] }
  0x20   :  { %v1538_v6 = vld [vmem:[#allocation8 + $0x24] sm:$0xf0]  ;;  %v1116_v7 = vor.u32 %v1531_v2, %v1113_v4  ;;  %v1537_v9 = vld [vmem:[#allocation8 + $0x24] sm:$0xf]  ;;  %v1139_v10 = vld [vmem:[#allocation8 + $0x28] sm:$0xf0] }
  0x21   :  { %v1138_v8 = vor.u32 %v1538_v6, %v1137_v5  ;;  %v1103_v11 = vld [vmem:[#allocation7] sm:$0xf]  ;;  %181 = vmatpush.bf16.msra.mxu0 %v1112_v3  ;;  %v1142_v12 = vor.u32 %v1537_v9, %v1139_v10  ;;  %v1530_v13 = vld [vmem:[#allocation7 + $0x4] sm:$0xf0]  ;;  %v1529_v14 = vld [vmem:[#allocation7 + $0x4] sm:$0xf] }
  0x22   :  { %v1105_v15 = vld [vmem:[#allocation7 + $0x8] sm:$0xf0]  ;;  %195 = vmatpush.bf16.msra.mxu1 %v1116_v7  ;;  %v1104_v16 = vor.u32 %v1530_v13, %v1103_v11  ;;  %v1129_v18 = vld [vmem:[#allocation8 + $0x10] sm:$0xf]  ;;  %v1536_v19 = vld [vmem:[#allocation8 + $0x14] sm:$0xf0] }
  0x23   :  { %248 = vmatpush.bf16.msra.mxu2 %v1138_v8  ;;  %v1108_v17 = vor.u32 %v1529_v14, %v1105_v15  ;;  %v1535_v20 = vld [vmem:[#allocation8 + $0x14] sm:$0xf]  ;;  %262 = vmatpush.bf16.msra.mxu3 %v1142_v12  ;;  %v1130_v21 = vor.u32 %v1536_v19, %v1129_v18  ;;  %v1131_v22 = vld [vmem:[#allocation8 + $0x18] sm:$0xf0]  ;;  %v141_v23 = vld [vmem:[#allocation2] sm:$0xff]  ;;  %vm171_vm0 = vcmask 261120  }
  0x24   :  { %v142_v24 = vld [vmem:[#allocation2 + $0x8] sm:$0xff]  ;;  %v1134_v25 = vor.u32 %v1535_v20, %v1131_v22  ;;  %v1121_v27 = vld [vmem:[#allocation8] sm:$0xf]  ;;  %v1533_v29 = vld [vmem:[#allocation8 + $0x4] sm:$0xf]  ;;  %vm239_vm1 = vcmask 392192  }
  0x25   :  { %v143_v26 = vpack.c.bf16 %v142_v24, %v141_v23  ;;  %v1534_v28 = vld [vmem:[#allocation8 + $0x4] sm:$0xf0]  ;;  %182 = vmatpush.bf16.msra.mxu0 %v1104_v16  ;;  %v1123_v30 = vld [vmem:[#allocation8 + $0x8] sm:$0xf0]  ;;  %v144_v31 = vld [vmem:[#allocation5] sm:$0xff]  ;;  %s1088_s3 = sshll.u32 %s1968_s9, 4  ;;  %s1089_s3 = int_to_ptr.hbm [resolvable:$true] %s1088_s3 }
  0x26   :  { %v145_v32 = vld [vmem:[#allocation5 + $0x8] sm:$0xff]  ;;  %196 = vmatpush.bf16.msra.mxu1 %v1108_v17  ;;  %v1122_v33 = vor.u32 %v1534_v28, %v1121_v27  ;;  %v1203_v34 = vld [vmem:[#allocation11 + $0x70] sm:$0xf]  ;;  %v1554_v35 = vld [vmem:[#allocation11 + $0x74] sm:$0xf0]  ;;  %v1126_v37 = vor.u32 %v1533_v29, %v1123_v30  ;;  %vm1076_vm2 = vcmask 130112  }
  0x27   :  { %249 = vmatpush.bf16.msra.mxu2 %v1130_v21  ;;  %v1267_v36 = vld [vmem:[#allocation11 + $0xf0] sm:$0xf]  ;;  %263 = vmatpush.bf16.msra.mxu3 %v1134_v25  ;;  %v1204_v38 = vor.u32 %v1554_v35, %v1203_v34  ;;  %v1570_v39 = vld [vmem:[#allocation11 + $0xf4] sm:$0xf0]  ;;  %v1195_v40 = vld [vmem:[#allocation11 + $0x60] sm:$0xf]  ;;  %v146_v45 = vpack.c.bf16 %v145_v32, %v144_v31 }
  0x28   :  { %v1552_v41 = vld [vmem:[#allocation11 + $0x64] sm:$0xf0]  ;;  %1117 = vmatmul.msk.bf16.vlgmr.msra.gmra.mxu0 %vm171_vm0, %v143_v26  ;;  %v1268_v42 = vor.u32 %v1570_v39, %v1267_v36  ;;  %v1259_v43 = vld [vmem:[#allocation11 + $0xe0] sm:$0xf]  ;;  %v1187_v47 = vld [vmem:[#allocation11 + $0x50] sm:$0xf] }
  0x29   :  { %v1568_v44 = vld [vmem:[#allocation11 + $0xe4] sm:$0xf0]  ;;  %1118 = vmatmul.msk.bf16.vlgmr.msra.gmra.mxu1 %vm171_vm0, %v143_v26  ;;  %691 = vmatpush.bf16.msrb.mxu0 %v1204_v38  ;;  %v1196_v46 = vor.u32 %v1552_v41, %v1195_v40  ;;  %v1550_v48 = vld [vmem:[#allocation11 + $0x54] sm:$0xf0]  ;;  %v1331_v50 = vld [vmem:[#allocation11 + $0x170] sm:$0xf] }
  0x2a   :  { %705 = vmatpush.bf16.msrb.mxu1 %v1268_v42  ;;  %v1260_v49 = vor.u32 %v1568_v44, %v1259_v43  ;;  %v1586_v51 = vld [vmem:[#allocation11 + $0x174] sm:$0xf0]  ;;  %v1395_v52 = vld [vmem:[#allocation11 + $0x1f0] sm:$0xf]  ;;  %v1323_v58 = vld [vmem:[#allocation11 + $0x160] sm:$0xf]  ;;  %v1188_v59 = vor.u32 %v1550_v48, %v1187_v47 }
  0x2b   :  { %250 = vmatpush.bf16.msra.mxu2 %v1122_v33  ;;  %264 = vmatpush.bf16.msra.mxu3 %v1126_v37  ;;  %v1251_v53 = vld [vmem:[#allocation11 + $0xd0] sm:$0xf]  ;;  %v1566_v54 = vld [vmem:[#allocation11 + $0xd4] sm:$0xf0]  ;;  %v1332_v55 = vor.u32 %v1586_v51, %v1331_v50  ;;  %v1584_v60 = vld [vmem:[#allocation11 + $0x164] sm:$0xf0] }
  0x2c   :  { %v1602_v56 = vld [vmem:[#allocation11 + $0x1f4] sm:$0xf0]  ;;  %v1387_v61 = vld [vmem:[#allocation11 + $0x1e0] sm:$0xf]  ;;  %v1600_v62 = vld [vmem:[#allocation11 + $0x1e4] sm:$0xf0]  ;;  %v1252_v63 = vor.u32 %v1566_v54, %v1251_v53  ;;  %v1324_v4 = vor.u32 %v1584_v60, %v1323_v58 }
  0x2d   :  { %v1396_v57 = vor.u32 %v1602_v56, %v1395_v52  ;;  %692 = vmatpush.bf16.msrb.mxu0 %v1196_v46  ;;  %v1179_v0 = vld [vmem:[#allocation11 + $0x40] sm:$0xf]  ;;  %v1548_v1 = vld [vmem:[#allocation11 + $0x44] sm:$0xf0]  ;;  %v1388_v5 = vor.u32 %v1600_v62, %v1387_v61  ;;  %v1315_v6 = vld [vmem:[#allocation11 + $0x150] sm:$0xf] }
  0x2e   :  { %1143 = vmatmul.msk.bf16.vlgmr.msra.gmra.mxu2 %vm239_vm1, %v146_v45  ;;  %1144 = vmatmul.msk.bf16.vlgmr.msra.gmra.mxu3 %vm239_vm1, %v146_v45  ;;  %v1243_v2 = vld [vmem:[#allocation11 + $0xc0] sm:$0xf]  ;;  %v1564_v3 = vld [vmem:[#allocation11 + $0xc4] sm:$0xf0]  ;;  %v1582_v7 = vld [vmem:[#allocation11 + $0x154] sm:$0xf0]  ;;  %v1180_v10 = vor.u32 %v1548_v1, %v1179_v0 }
  0x2f   :  { %706 = vmatpush.bf16.msrb.mxu1 %v1260_v49  ;;  %719 = vmatpush.bf16.msrb.mxu2 %v1332_v55  ;;  %v1379_v8 = vld [vmem:[#allocation11 + $0x1d0] sm:$0xf]  ;;  %v1598_v9 = vld [vmem:[#allocation11 + $0x1d4] sm:$0xf0]  ;;  %v1244_v11 = vor.u32 %v1564_v3, %v1243_v2  ;;  %v1316_v16 = vor.u32 %v1582_v7, %v1315_v6  ;;  %v1307_v18 = vld [vmem:[#allocation11 + $0x140] sm:$0xf] }
  0x30   :  { %733 = vmatpush.bf16.msrb.mxu3 %v1396_v57  ;;  %v1171_v12 = vld [vmem:[#allocation11 + $0x30] sm:$0xf]  ;;  %v1546_v13 = vld [vmem:[#allocation11 + $0x34] sm:$0xf0]  ;;  %v1380_v17 = vor.u32 %v1598_v9, %v1379_v8  ;;  %v1580_v19 = vld [vmem:[#allocation11 + $0x144] sm:$0xf0] }
  0x31   :  { %693 = vmatpush.bf16.msrb.mxu0 %v1188_v59  ;;  %v1235_v14 = vld [vmem:[#allocation11 + $0xb0] sm:$0xf]  ;;  %v1562_v15 = vld [vmem:[#allocation11 + $0xb4] sm:$0xf0]  ;;  %v1371_v20 = vld [vmem:[#allocation11 + $0x1c0] sm:$0xf]  ;;  %v1172_v22 = vor.u32 %v1546_v13, %v1171_v12  ;;  %v1308_v28 = vor.u32 %v1580_v19, %v1307_v18 }
  0x32   :  { %v1596_v21 = vld [vmem:[#allocation11 + $0x1c4] sm:$0xf0]  ;;  %v1236_v23 = vor.u32 %v1562_v15, %v1235_v14  ;;  %v1163_v24 = vld [vmem:[#allocation11 + $0x20] sm:$0xf]  ;;  %v1299_v30 = vld [vmem:[#allocation11 + $0x130] sm:$0xf] }
  0x33   :  { %707 = vmatpush.bf16.msrb.mxu1 %v1252_v63  ;;  %720 = vmatpush.bf16.msrb.mxu2 %v1324_v4  ;;  %v1544_v25 = vld [vmem:[#allocation11 + $0x24] sm:$0xf0]  ;;  %v1227_v26 = vld [vmem:[#allocation11 + $0xa0] sm:$0xf]  ;;  %v1372_v29 = vor.u32 %v1596_v21, %v1371_v20  ;;  %v1578_v31 = vld [vmem:[#allocation11 + $0x134] sm:$0xf0] }
  0x34   :  { %734 = vmatpush.bf16.msrb.mxu3 %v1388_v5  ;;  %v1560_v27 = vld [vmem:[#allocation11 + $0xa4] sm:$0xf0]  ;;  %v1363_v32 = vld [vmem:[#allocation11 + $0x1b0] sm:$0xf]  ;;  %v1594_v33 = vld [vmem:[#allocation11 + $0x1b4] sm:$0xf0]  ;;  %v1164_v34 = vor.u32 %v1544_v25, %v1163_v24  ;;  %v1300_v40 = vor.u32 %v1578_v31, %v1299_v30 }
  0x35   :  { %694 = vmatpush.bf16.msrb.mxu0 %v1180_v10  ;;  %v1228_v35 = vor.u32 %v1560_v27, %v1227_v26  ;;  %v1155_v36 = vld [vmem:[#allocation11 + $0x10] sm:$0xf]  ;;  %v1542_v37 = vld [vmem:[#allocation11 + $0x14] sm:$0xf0]  ;;  %v1364_v41 = vor.u32 %v1594_v33, %v1363_v32  ;;  %v1147_v44 = vld [vmem:[#allocation11] sm:$0xf] }
  0x36   :  { %v1219_v38 = vld [vmem:[#allocation11 + $0x90] sm:$0xf]  ;;  %v1558_v39 = vld [vmem:[#allocation11 + $0x94] sm:$0xf0]  ;;  %v1156_v42 = vor.u32 %v1542_v37, %v1155_v36  ;;  %v1540_v45 = vld [vmem:[#allocation11 + $0x4] sm:$0xf0] }
  0x37   :  { %708 = vmatpush.bf16.msrb.mxu1 %v1244_v11  ;;  %721 = vmatpush.bf16.msrb.mxu2 %v1316_v16  ;;  %v1220_v43 = vor.u32 %v1558_v39, %v1219_v38  ;;  %v1211_v46 = vld [vmem:[#allocation11 + $0x80] sm:$0xf]  ;;  %v1556_v47 = vld [vmem:[#allocation11 + $0x84] sm:$0xf0]  ;;  %v1148_v48 = vor.u32 %v1540_v45, %v1147_v44  ;;  %v1553_v50 = vld [vmem:[#allocation11 + $0x74] sm:$0xf] }
  0x38   :  { %735 = vmatpush.bf16.msrb.mxu3 %v1380_v17  ;;  %v1212_v49 = vor.u32 %v1556_v47, %v1211_v46  ;;  %v1205_v51 = vld [vmem:[#allocation11 + $0x78] sm:$0xf0]  ;;  %v1569_v52 = vld [vmem:[#allocation11 + $0xf4] sm:$0xf]  ;;  %v1291_v55 = vld [vmem:[#allocation11 + $0x120] sm:$0xf] }
  0x39   :  { %695 = vmatpush.bf16.msrb.mxu0 %v1172_v22  ;;  %v1208_v53 = vor.u32 %v1553_v50, %v1205_v51  ;;  %v1269_v54 = vld [vmem:[#allocation11 + $0xf8] sm:$0xf0]  ;;  %v1576_v57 = vld [vmem:[#allocation11 + $0x124] sm:$0xf0]  ;;  %v1355_v58 = vld [vmem:[#allocation11 + $0x1a0] sm:$0xf] }
  0x3a   :  { %v1272_v56 = vor.u32 %v1569_v52, %v1269_v54  ;;  %v1292_v59 = vor.u32 %v1576_v57, %v1291_v55  ;;  %v1592_v60 = vld [vmem:[#allocation11 + $0x1a4] sm:$0xf0]  ;;  %v1551_v62 = vld [vmem:[#allocation11 + $0x64] sm:$0xf]  ;;  %v1197_v63 = vld [vmem:[#allocation11 + $0x68] sm:$0xf0] }
  0x3b   :  { %709 = vmatpush.bf16.msrb.mxu1 %v1236_v23  ;;  %722 = vmatpush.bf16.msrb.mxu2 %v1308_v28  ;;  %v1356_v61 = vor.u32 %v1592_v60, %v1355_v58  ;;  %v1200_v0 = vor.u32 %v1551_v62, %v1197_v63  ;;  %v1567_v1 = vld [vmem:[#allocation11 + $0xe4] sm:$0xf]  ;;  %v1261_v2 = vld [vmem:[#allocation11 + $0xe8] sm:$0xf0]  ;;  %v1283_v3 = vld [vmem:[#allocation11 + $0x110] sm:$0xf] }
  0x3c   :  { %736 = vmatpush.bf16.msrb.mxu3 %v1372_v29  ;;  %v1264_v4 = vor.u32 %v1567_v1, %v1261_v2  ;;  %v1574_v5 = vld [vmem:[#allocation11 + $0x114] sm:$0xf0]  ;;  %v1347_v6 = vld [vmem:[#allocation11 + $0x190] sm:$0xf]  ;;  %v1549_v10 = vld [vmem:[#allocation11 + $0x54] sm:$0xf] }
  0x3d   :  { %696 = vmatpush.bf16.msrb.mxu0 %v1164_v34  ;;  %v1590_v7 = vld [vmem:[#allocation11 + $0x194] sm:$0xf0]  ;;  %v1284_v8 = vor.u32 %v1574_v5, %v1283_v3  ;;  %v1189_v11 = vld [vmem:[#allocation11 + $0x58] sm:$0xf0]  ;;  %v1565_v12 = vld [vmem:[#allocation11 + $0xd4] sm:$0xf] }
  0x3e   :  { %v1348_v9 = vor.u32 %v1590_v7, %v1347_v6  ;;  %v1192_v13 = vor.u32 %v1549_v10, %v1189_v11  ;;  %v1253_v14 = vld [vmem:[#allocation11 + $0xd8] sm:$0xf0]  ;;  %v1275_v15 = vld [vmem:[#allocation11 + $0x100] sm:$0xf]  ;;  %v1572_v16 = vld [vmem:[#allocation11 + $0x104] sm:$0xf0] }
  0x3f   :  { %710 = vmatpush.bf16.msrb.mxu1 %v1228_v35  ;;  %723 = vmatpush.bf16.msrb.mxu2 %v1300_v40  ;;  %v1256_v17 = vor.u32 %v1565_v12, %v1253_v14  ;;  %v1276_v18 = vor.u32 %v1572_v16, %v1275_v15  ;;  %v1339_v19 = vld [vmem:[#allocation11 + $0x180] sm:$0xf]  ;;  %v1588_v20 = vld [vmem:[#allocation11 + $0x184] sm:$0xf0]  ;;  %v1585_v21 = vld [vmem:[#allocation11 + $0x174] sm:$0xf] }
  0x40   :  { %737 = vmatpush.bf16.msrb.mxu3 %v1364_v41  ;;  %v1340_v22 = vor.u32 %v1588_v20, %v1339_v19  ;;  %v1333_v23 = vld [vmem:[#allocation11 + $0x178] sm:$0xf0]  ;;  %v1601_v24 = vld [vmem:[#allocation11 + $0x1f4] sm:$0xf]  ;;  %v1547_v28 = vld [vmem:[#allocation11 + $0x44] sm:$0xf] }
  0x41   :  { %697 = vmatpush.bf16.msrb.mxu0 %v1156_v42  ;;  %v1397_v25 = vld [vmem:[#allocation11 + $0x1f8] sm:$0xf0]  ;;  %v1336_v26 = vor.u32 %v1585_v21, %v1333_v23  ;;  %v1181_v29 = vld [vmem:[#allocation11 + $0x48] sm:$0xf0]  ;;  %v1563_v31 = vld [vmem:[#allocation11 + $0xc4] sm:$0xf] }
  0x42   :  { %v1400_v27 = vor.u32 %v1601_v24, %v1397_v25  ;;  %v1184_v30 = vor.u32 %v1547_v28, %v1181_v29  ;;  %v1245_v32 = vld [vmem:[#allocation11 + $0xc8] sm:$0xf0]  ;;  %v1583_v34 = vld [vmem:[#allocation11 + $0x164] sm:$0xf]  ;;  %v1545_v40 = vld [vmem:[#allocation11 + $0x34] sm:$0xf] }
  0x43   :  { %711 = vmatpush.bf16.msrb.mxu1 %v1220_v43  ;;  %724 = vmatpush.bf16.msrb.mxu2 %v1292_v59  ;;  %v1248_v33 = vor.u32 %v1563_v31, %v1245_v32  ;;  %v1325_v35 = vld [vmem:[#allocation11 + $0x168] sm:$0xf0]  ;;  %v1599_v37 = vld [vmem:[#allocation11 + $0x1e4] sm:$0xf]  ;;  %v1173_v41 = vld [vmem:[#allocation11 + $0x38] sm:$0xf0] }
  0x44   :  { %738 = vmatpush.bf16.msrb.mxu3 %v1356_v61  ;;  %v1328_v36 = vor.u32 %v1583_v34, %v1325_v35  ;;  %v1389_v38 = vld [vmem:[#allocation11 + $0x1e8] sm:$0xf0]  ;;  %v1561_v42 = vld [vmem:[#allocation11 + $0xb4] sm:$0xf]  ;;  %v1176_v43 = vor.u32 %v1545_v40, %v1173_v41  ;;  %v1237_v44 = vld [vmem:[#allocation11 + $0xb8] sm:$0xf0] }
  0x45   :  { %698 = vmatpush.bf16.msrb.mxu0 %v1148_v48  ;;  %v1392_v39 = vor.u32 %v1599_v37, %v1389_v38  ;;  %v1240_v45 = vor.u32 %v1561_v42, %v1237_v44  ;;  %v1581_v46 = vld [vmem:[#allocation11 + $0x154] sm:$0xf]  ;;  %v1317_v47 = vld [vmem:[#allocation11 + $0x158] sm:$0xf0]  ;;  %v1543_v52 = vld [vmem:[#allocation11 + $0x24] sm:$0xf] }
  0x46   :  { %v1597_v48 = vld [vmem:[#allocation11 + $0x1d4] sm:$0xf]  ;;  %v1381_v50 = vld [vmem:[#allocation11 + $0x1d8] sm:$0xf0]  ;;  %v1559_v54 = vld [vmem:[#allocation11 + $0xa4] sm:$0xf] }
  0x47   :  { %712 = vmatpush.bf16.msrb.mxu1 %v1212_v49  ;;  %725 = vmatpush.bf16.msrb.mxu2 %v1284_v8  ;;  %v1320_v49 = vor.u32 %v1581_v46, %v1317_v47  ;;  %v1384_v51 = vor.u32 %v1597_v48, %v1381_v50  ;;  %v1579_v58 = vld [vmem:[#allocation11 + $0x144] sm:$0xf]  ;;  %v1309_v59 = vld [vmem:[#allocation11 + $0x148] sm:$0xf0]  ;;  %v1157_v1 = vld [vmem:[#allocation11 + $0x18] sm:$0xf0] }
  0x48   :  { %739 = vmatpush.bf16.msrb.mxu3 %v1348_v9  ;;  %v1595_v60 = vld [vmem:[#allocation11 + $0x1c4] sm:$0xf]  ;;  %v1312_v61 = vor.u32 %v1579_v58, %v1309_v59  ;;  %v1373_v62 = vld [vmem:[#allocation11 + $0x1c8] sm:$0xf0]  ;;  %v1557_v2 = vld [vmem:[#allocation11 + $0x94] sm:$0xf] }
  0x49   :  { %747 = vmatpush.bf16.msra.mxu0 %v1208_v53  ;;  %v1165_v53 = vld [vmem:[#allocation11 + $0x28] sm:$0xf0]  ;;  %v1376_v63 = vor.u32 %v1595_v60, %v1373_v62  ;;  %v1577_v6 = vld [vmem:[#allocation11 + $0x134] sm:$0xf]  ;;  %v1301_v7 = vld [vmem:[#allocation11 + $0x138] sm:$0xf0] }
  0x4a   :  { %v1168_v55 = vor.u32 %v1543_v52, %v1165_v53  ;;  %v1593_v8 = vld [vmem:[#allocation11 + $0x1b4] sm:$0xf]  ;;  %v1304_v9 = vor.u32 %v1577_v6, %v1301_v7  ;;  %v1365_v10 = vld [vmem:[#allocation11 + $0x1b8] sm:$0xf0]  ;;  %v1539_v12 = vld [vmem:[#allocation11 + $0x4] sm:$0xf] }
  0x4b   :  { %761 = vmatpush.bf16.msra.mxu1 %v1272_v56  ;;  %726 = vmatpush.bf16.msrb.mxu2 %v1276_v18  ;;  %v1229_v56 = vld [vmem:[#allocation11 + $0xa8] sm:$0xf0]  ;;  %v1368_v11 = vor.u32 %v1593_v8, %v1365_v10  ;;  %v1555_v14 = vld [vmem:[#allocation11 + $0x84] sm:$0xf]  ;;  %v271_v23 = vld [vmem:[#allocation10] sm:$0xf] }
  0x4c   :  { %740 = vmatpush.bf16.msrb.mxu3 %v1340_v22  ;;  %v1232_v57 = vor.u32 %v1559_v54, %v1229_v56  ;;  %v1213_v16 = vld [vmem:[#allocation11 + $0x88] sm:$0xf0]  ;;  %v1591_v21 = vld [vmem:[#allocation11 + $0x1a4] sm:$0xf]  ;;  %v1589_v28 = vld [vmem:[#allocation11 + $0x194] sm:$0xf] }
  0x4d   :  { %748 = vmatpush.bf16.msra.mxu0 %v1200_v0  ;;  %v1541_v0 = vld [vmem:[#allocation11 + $0x14] sm:$0xf]  ;;  %v1293_v18 = vld [vmem:[#allocation11 + $0x128] sm:$0xf0]  ;;  %v1216_v19 = vor.u32 %v1555_v14, %v1213_v16  ;;  %v273_v29 = vperm.slane %v271_v23, 0  ;;  %v276_v56 = vperm.slane %v271_v23, 3 }
  0x4e   :  { %v1160_v3 = vor.u32 %v1541_v0, %v1157_v1  ;;  %v1357_v22 = vld [vmem:[#allocation11 + $0x1a8] sm:$0xf0]  ;;  %v1349_v32 = vld [vmem:[#allocation11 + $0x198] sm:$0xf0]  ;;  %v1571_v35 = vld [vmem:[#allocation11 + $0x104] sm:$0xf] }
  0x4f   :  { %762 = vmatpush.bf16.msra.mxu1 %v1264_v4  ;;  %775 = vmatpush.bf16.msra.mxu2 %v1336_v26  ;;  %v1221_v4 = vld [vmem:[#allocation11 + $0x98] sm:$0xf0]  ;;  %v1360_v24 = vor.u32 %v1591_v21, %v1357_v22  ;;  %v1573_v26 = vld [vmem:[#allocation11 + $0x114] sm:$0xf]  ;;  %v1352_v34 = vor.u32 %v1589_v28, %v1349_v32  ;;  %v1587_v37 = vld [vmem:[#allocation11 + $0x184] sm:$0xf] }
  0x50   :  { %789 = vmatpush.bf16.msra.mxu3 %v1400_v27  ;;  %v1224_v5 = vor.u32 %v1557_v2, %v1221_v4  ;;  %v1285_v27 = vld [vmem:[#allocation11 + $0x118] sm:$0xf0]  ;;  %v1341_v38 = vld [vmem:[#allocation11 + $0x188] sm:$0xf0]  ;;  %v1618_v6 = vld [vmem:[#allocation13 + $0x74] sm:$0xf0] }
  0x51   :  { %749 = vmatpush.bf16.msra.mxu0 %v1192_v13  ;;  %v1149_v13 = vld [vmem:[#allocation11 + $0x8] sm:$0xf0]  ;;  %v1288_v31 = vor.u32 %v1573_v26, %v1285_v27  ;;  %v1344_v42 = vor.u32 %v1587_v37, %v1341_v38  ;;  %v1617_v7 = vld [vmem:[#allocation13 + $0x74] sm:$0xf]  ;;  %v1445_v21 = vld [vmem:[#allocation13 + $0x58] sm:$0xf0] }
  0x52   :  { %v1152_v15 = vor.u32 %v1539_v12, %v1149_v13  ;;  %v1616_v12 = vld [vmem:[#allocation13 + $0x64] sm:$0xf0]  ;;  %v1615_v13 = vld [vmem:[#allocation13 + $0x64] sm:$0xf]  ;;  %v1437_v27 = vld [vmem:[#allocation13 + $0x48] sm:$0xf0] }
  0x53   :  { %763 = vmatpush.bf16.msra.mxu1 %v1256_v17  ;;  %776 = vmatpush.bf16.msra.mxu2 %v1328_v36  ;;  %v1575_v17 = vld [vmem:[#allocation11 + $0x124] sm:$0xf]  ;;  %v1277_v36 = vld [vmem:[#allocation11 + $0x108] sm:$0xf0]  ;;  %v1523_v32 = vld [vmem:[#allocation13 + $0xf0] sm:$0xf] }
  0x54   :  { %790 = vmatpush.bf16.msra.mxu3 %v1392_v39  ;;  %v1296_v20 = vor.u32 %v1575_v17, %v1293_v18  ;;  %v1280_v40 = vor.u32 %v1571_v35, %v1277_v36  ;;  %v1443_v17 = vld [vmem:[#allocation13 + $0x50] sm:$0xf]  ;;  %v1614_v18 = vld [vmem:[#allocation13 + $0x54] sm:$0xf0]  ;;  %v1429_v36 = vld [vmem:[#allocation13 + $0x38] sm:$0xf0] }
  0x55   :  { %750 = vmatpush.bf16.msra.mxu0 %v1184_v30  ;;  %v1633_v37 = vld [vmem:[#allocation13 + $0xf4] sm:$0xf]  ;;  %v1525_v38 = vld [vmem:[#allocation13 + $0xf8] sm:$0xf0]  ;;  %vm1079_vm3 = vcmask 122880  }
  0x57   :  { %764 = vmatpush.bf16.msra.mxu1 %v1248_v33  ;;  %777 = vmatpush.bf16.msra.mxu2 %v1320_v49  ;;  %v274_v33 = vperm.slane %v271_v23, 1 }
  0x58   :  { %791 = vmatpush.bf16.msra.mxu3 %v1384_v51 }
  0x59   :  { %751 = vmatpush.bf16.msra.mxu0 %v1176_v43 }
  0x5b   :  { %765 = vmatpush.bf16.msra.mxu1 %v1240_v45  ;;  %778 = vmatpush.bf16.msra.mxu2 %v1312_v61 }
  0x5c   :  { %792 = vmatpush.bf16.msra.mxu3 %v1376_v63 }
  0x5d   :  { %752 = vmatpush.bf16.msra.mxu0 %v1168_v55  ;;  %v275_v55 = vperm.slane %v271_v23, 2  ;;  %v1435_v23 = vld [vmem:[#allocation13 + $0x40] sm:$0xf] }
  0x5f   :  { %766 = vmatpush.bf16.msra.mxu1 %v1232_v57  ;;  %779 = vmatpush.bf16.msra.mxu2 %v1304_v9  ;;  %v1461_v9 = vld [vmem:[#allocation13 + $0x78] sm:$0xf0] }
  0x60   :  { %793 = vmatpush.bf16.msra.mxu3 %v1368_v11  ;;  %v1464_v10 = vor.u32 %v1617_v7, %v1461_v9  ;;  %v1451_v11 = vld [vmem:[#allocation13 + $0x60] sm:$0xf]  ;;  %v1405_v7 = vld [vmem:[#allocation13 + $0x8] sm:$0xf0] }
  0x61   :  { %753 = vmatpush.bf16.msra.mxu0 %v1160_v3  ;;  %v1452_v14 = vor.u32 %v1616_v12, %v1451_v11  ;;  %v1501_v11 = vld [vmem:[#allocation13 + $0xc8] sm:$0xf0] }
  0x63   :  { %767 = vmatpush.bf16.msra.mxu1 %v1224_v5  ;;  %780 = vmatpush.bf16.msra.mxu2 %v1296_v20  ;;  %v1459_v5 = vld [vmem:[#allocation13 + $0x70] sm:$0xf]  ;;  %v1444_v20 = vor.u32 %v1614_v18, %v1443_v17  ;;  %v1493_v17 = vld [vmem:[#allocation13 + $0xb8] sm:$0xf0] }
  0x64   :  { %794 = vmatpush.bf16.msra.mxu3 %v1360_v24  ;;  %v1460_v8 = vor.u32 %v1618_v6, %v1459_v5  ;;  %v1612_v24 = vld [vmem:[#allocation13 + $0x44] sm:$0xf0]  ;;  %v1603_v6 = vld [vmem:[#allocation13 + $0x4] sm:$0xf] }
  0x65   :  { %754 = vmatpush.bf16.msra.mxu0 %v1152_v15  ;;  %v1453_v15 = vld [vmem:[#allocation13 + $0x68] sm:$0xf0]  ;;  %v1436_v26 = vor.u32 %v1612_v24, %v1435_v23  ;;  %v1628_v5 = vld [vmem:[#allocation13 + $0xc4] sm:$0xf0]  ;;  %v1408_v9 = vor.u32 %v1603_v6, %v1405_v7 }
  0x66   :  { %v1456_v16 = vor.u32 %v1615_v13, %v1453_v15  ;;  %v1491_v13 = vld [vmem:[#allocation13 + $0xb0] sm:$0xf]  ;;  %v1625_v15 = vld [vmem:[#allocation13 + $0xb4] sm:$0xf]  ;;  %v1485_v24 = vld [vmem:[#allocation13 + $0xa8] sm:$0xf0] }
  0x67   :  { %768 = vmatpush.bf16.msra.mxu1 %v1216_v19  ;;  %781 = vmatpush.bf16.msra.mxu2 %v1288_v31  ;;  %v1613_v19 = vld [vmem:[#allocation13 + $0x54] sm:$0xf] }
  0x68   :  { %795 = vmatpush.bf16.msra.mxu3 %v1352_v34  ;;  %v1448_v22 = vor.u32 %v1613_v19, %v1445_v21  ;;  %v1609_v34 = vld [vmem:[#allocation13 + $0x34] sm:$0xf]  ;;  %v1496_v19 = vor.u32 %v1625_v15, %v1493_v17  ;;  %v1624_v21 = vld [vmem:[#allocation13 + $0xa4] sm:$0xf0] }
  0x6b   :  { %782 = vmatpush.bf16.msra.mxu2 %v1280_v40  ;;  %v1528_v40 = vor.u32 %v1633_v37, %v1525_v38  ;;  %v1620_v37 = vld [vmem:[#allocation13 + $0x84] sm:$0xf0]  ;;  %v1619_v38 = vld [vmem:[#allocation13 + $0x84] sm:$0xf] }
  0x6c   :  { %796 = vmatpush.bf16.msra.mxu3 %v1344_v42  ;;  %v1608_v42 = vld [vmem:[#allocation13 + $0x24] sm:$0xf0] }
  0xa5   :  { %v184_v25 = vpop.f32.mrf.mxu0 }
  0xa6   :  { %v198_v30 = vpop.f32.mrf.mxu1  ;;  %v281_v39 = vadd.f32 %v273_v29, %v184_v25  ;;  %v1611_v25 = vld [vmem:[#allocation13 + $0x44] sm:$0xf] }
  0xa7   :  { %v282_v41 = vadd.f32 %v274_v33, %v198_v30  ;;  %v1440_v28 = vor.u32 %v1611_v25, %v1437_v27  ;;  %v1610_v30 = vld [vmem:[#allocation13 + $0x34] sm:$0xf0] }
  0xa8   :  { %v289_v44 = vmax.f32 %v281_v39, 0.0  ;;  %v1432_v39 = vor.u32 %v1609_v34, %v1429_v36  ;;  %v1467_v36 = vld [vmem:[#allocation13 + $0x80] sm:$0xf] }
  0xa9   :  { %v290_v47 = vmax.f32 %v282_v41, 0.0  ;;  %v1419_v41 = vld [vmem:[#allocation13 + $0x20] sm:$0xf] }
  0xad   :  { %v186_v43 = vpop.f32.mrf.mxu0 }
  0xae   :  { %v285_v45 = vadd.f32 %v273_v29, %v186_v43  ;;  %v200_v46 = vpop.f32.mrf.mxu1  ;;  %v1427_v29 = vld [vmem:[#allocation13 + $0x30] sm:$0xf]  ;;  %v1515_v43 = vld [vmem:[#allocation13 + $0xe0] sm:$0xf] }
  0xaf   :  { %v286_v48 = vadd.f32 %v274_v33, %v200_v46  ;;  %v1428_v31 = vor.u32 %v1610_v30, %v1427_v29  ;;  %v1634_v33 = vld [vmem:[#allocation13 + $0xf4] sm:$0xf0]  ;;  %v1607_v46 = vld [vmem:[#allocation13 + $0x24] sm:$0xf]  ;;  %v1621_v30 = vld [vmem:[#allocation13 + $0x94] sm:$0xf] }
  0xb0   :  { %v293_v49 = vmax.f32 %v285_v45, 0.0  ;;  %v1524_v35 = vor.u32 %v1634_v33, %v1523_v32  ;;  %v1632_v45 = vld [vmem:[#allocation13 + $0xe4] sm:$0xf0]  ;;  %v1622_v29 = vld [vmem:[#allocation13 + $0x94] sm:$0xf0] }
  0xb1   :  { %v252_v50 = vpop.f32.mrf.mxu2  ;;  %v294_v51 = vmax.f32 %v286_v48, 0.0  ;;  %v266_v52 = vpop.f32.mrf.mxu3  ;;  %v1516_v48 = vor.u32 %v1632_v45, %v1515_v43  ;;  %v1477_v32 = vld [vmem:[#allocation13 + $0x98] sm:$0xf0] }
  0xb2   :  { %v297_v53 = vpack.c.bf16 %v293_v49, %v289_v44  ;;  %v283_v57 = vadd.f32 %v275_v55, %v252_v50  ;;  %v284_v58 = vadd.f32 %v276_v56, %v266_v52  ;;  %v1420_v44 = vor.u32 %v1608_v42, %v1419_v41  ;;  %v1631_v50 = vld [vmem:[#allocation13 + $0xe4] sm:$0xf] }
  0xb3   :  { %v298_v54 = vpack.c.bf16 %v294_v51, %v290_v47  ;;  %v1421_v47 = vld [vmem:[#allocation13 + $0x28] sm:$0xf0]  ;;  %v1480_v33 = vor.u32 %v1621_v30, %v1477_v32 }
  0xb4   :  { %699 = vmatmul.bf16.vlgmr.msrb.gmra.mxu0 %v297_v53  ;;  %v291_v63 = vmax.f32 %v283_v57, 0.0  ;;  %v292_v1 = vmax.f32 %v284_v58, 0.0  ;;  %v1424_v49 = vor.u32 %v1607_v46, %v1421_v47  ;;  %v1517_v51 = vld [vmem:[#allocation13 + $0xe8] sm:$0xf0]  ;;  %v1630_v57 = vld [vmem:[#allocation13 + $0xd4] sm:$0xf0] }
  0xb5   :  { %713 = vmatmul.bf16.vlgmr.msrb.gmra.mxu1 %v298_v54  ;;  %1007 = vmatpush.bf16.msrb.mxu0 %v1460_v8  ;;  %v1520_v52 = vor.u32 %v1631_v50, %v1517_v51  ;;  %v1605_v58 = vld [vmem:[#allocation13 + $0x14] sm:$0xf] }
  0xb6   :  { %1021 = vmatpush.bf16.msrb.mxu1 %v1524_v35 }
  0xb9   :  { %v254_v59 = vpop.f32.mrf.mxu2  ;;  %v268_v61 = vpop.f32.mrf.mxu3  ;;  %1008 = vmatpush.bf16.msrb.mxu0 %v1452_v14  ;;  %v1626_v14 = vld [vmem:[#allocation13 + $0xb4] sm:$0xf0] }
  0xba   :  { %v287_v60 = vadd.f32 %v275_v55, %v254_v59  ;;  %v288_v62 = vadd.f32 %v276_v56, %v268_v61  ;;  %1022 = vmatpush.bf16.msrb.mxu1 %v1516_v48  ;;  %v1507_v55 = vld [vmem:[#allocation13 + $0xd0] sm:$0xf]  ;;  %v1413_v59 = vld [vmem:[#allocation13 + $0x18] sm:$0xf0] }
  0xbb   :  { %v1416_v61 = vor.u32 %v1605_v58, %v1413_v59 }
  0xbc   :  { %v295_v0 = vmax.f32 %v287_v60, 0.0  ;;  %v296_v2 = vmax.f32 %v288_v62, 0.0  ;;  %v1508_v60 = vor.u32 %v1630_v57, %v1507_v55  ;;  %v1629_v62 = vld [vmem:[#allocation13 + $0xd4] sm:$0xf] }
  0xbd   :  { %1009 = vmatpush.bf16.msrb.mxu0 %v1444_v20  ;;  %v1483_v20 = vld [vmem:[#allocation13 + $0xa0] sm:$0xf] }
  0xbe   :  { %v299_v3 = vpack.c.bf16 %v295_v0, %v291_v63  ;;  %v300_v4 = vpack.c.bf16 %v296_v2, %v292_v1  ;;  %v1509_v63 = vld [vmem:[#allocation13 + $0xd8] sm:$0xf0]  ;;  %1023 = vmatpush.bf16.msrb.mxu1 %v1508_v60  ;;  %v1403_v1 = vld [vmem:[#allocation13] sm:$0xf]  ;;  %v1604_v2 = vld [vmem:[#allocation13 + $0x4] sm:$0xf0]  ;;  %v1484_v23 = vor.u32 %v1624_v21, %v1483_v20 }
  0xbf   :  { %v1512_v0 = vor.u32 %v1629_v62, %v1509_v63 }
  0xc0   :  { %727 = vmatmul.bf16.vlgmr.msrb.gmra.mxu2 %v299_v3  ;;  %741 = vmatmul.bf16.vlgmr.msrb.gmra.mxu3 %v300_v4 }
  0xc1   :  { %1035 = vmatpush.bf16.msrb.mxu2 %v1464_v10  ;;  %1010 = vmatpush.bf16.msrb.mxu0 %v1436_v26  ;;  %v1627_v10 = vld [vmem:[#allocation13 + $0xc4] sm:$0xf]  ;;  %v365_v26 = vld [vmem:[%s1965_s6] sm:$0x3] }
  0xc2   :  { %1049 = vmatpush.bf16.msrb.mxu3 %v1528_v40  ;;  %v1504_v12 = vor.u32 %v1627_v10, %v1501_v11  ;;  %v367_v34 = vperm.slane %v365_v26, 0  ;;  %v1469_v40 = vld [vmem:[#allocation13 + $0x88] sm:$0xf0]  ;;  %v368_v55 = vperm.slane %v365_v26, 1 }
  0xc3   :  { %v1472_v41 = vor.u32 %v1619_v38, %v1469_v40 }
  0xc4   :  { %755 = vmatmul.bf16.vlgmr.msra.gmra.mxu0 %v297_v53  ;;  %v1411_v53 = vld [vmem:[#allocation13 + $0x10] sm:$0xf] }
  0xc5   :  { %769 = vmatmul.bf16.vlgmr.msra.gmra.mxu1 %v298_v54  ;;  %1036 = vmatpush.bf16.msrb.mxu2 %v1456_v16  ;;  %v1606_v54 = vld [vmem:[#allocation13 + $0x14] sm:$0xf0]  ;;  %v1492_v16 = vor.u32 %v1626_v14, %v1491_v13  ;;  %v841_v14 = vld [vmem:[%s1967_s8] sm:$0x3]  ;;  %s1856_s8 = smov [#allocation14]  }
  0xc6   :  { %1011 = vmatpush.bf16.msrb.mxu0 %v1428_v31  ;;  %1050 = vmatpush.bf16.msrb.mxu3 %v1520_v52  ;;  %v1412_v56 = vor.u32 %v1606_v54, %v1411_v53  ;;  %v843_v17 = vperm.slane %v841_v14, 0  ;;  %s1086_s18 = sshll.u32 %s1856_s8, 4  ;;  %s1087_s18 = int_to_ptr.vmem [resolvable:$true] %s1086_s18 }
  0xc9   :  { %1037 = vmatpush.bf16.msrb.mxu2 %v1448_v22  ;;  %v1623_v22 = vld [vmem:[#allocation13 + $0xa4] sm:$0xf] }
  0xca   :  { %1012 = vmatpush.bf16.msrb.mxu0 %v1420_v44  ;;  %1051 = vmatpush.bf16.msrb.mxu3 %v1512_v0  ;;  %v1488_v25 = vor.u32 %v1623_v22, %v1485_v24 }
  0xcd   :  { %1038 = vmatpush.bf16.msrb.mxu2 %v1440_v28  ;;  %v1475_v28 = vld [vmem:[#allocation13 + $0x90] sm:$0xf] }
  0xce   :  { %1013 = vmatpush.bf16.msrb.mxu0 %v1412_v56  ;;  %1052 = vmatpush.bf16.msrb.mxu3 %v1504_v12  ;;  %v1476_v31 = vor.u32 %v1622_v29, %v1475_v28 }
  0xd0   :  { %783 = vmatmul.bf16.vlgmr.msra.gmra.mxu2 %v299_v3  ;;  %797 = vmatmul.bf16.vlgmr.msra.gmra.mxu3 %v300_v4  ;;  %v1499_v3 = vld [vmem:[#allocation13 + $0xc0] sm:$0xf]  ;;  %v1404_v4 = vor.u32 %v1604_v2, %v1403_v1 }
  0xd1   :  { %1039 = vmatpush.bf16.msrb.mxu2 %v1432_v39  ;;  %v1500_v8 = vor.u32 %v1628_v5, %v1499_v3  ;;  %v1468_v39 = vor.u32 %v1620_v37, %v1467_v36 }
  0xd2   :  { %1014 = vmatpush.bf16.msrb.mxu0 %v1404_v4  ;;  %1053 = vmatpush.bf16.msrb.mxu3 %v1496_v19 }
  0xd3   :  { %1024 = vmatpush.bf16.msrb.mxu1 %v1500_v8 }
  0xd5   :  { %1040 = vmatpush.bf16.msrb.mxu2 %v1424_v49 }
  0xd6   :  { %1054 = vmatpush.bf16.msrb.mxu3 %v1488_v25 }
  0xd7   :  { %1025 = vmatpush.bf16.msrb.mxu1 %v1492_v16 }
  0xd9   :  { %1041 = vmatpush.bf16.msrb.mxu2 %v1416_v61 }
  0xda   :  { %1055 = vmatpush.bf16.msrb.mxu3 %v1480_v33 }
  0xdb   :  { %1026 = vmatpush.bf16.msrb.mxu1 %v1484_v23 }
  0xdd   :  { %1042 = vmatpush.bf16.msrb.mxu2 %v1408_v9 }
  0xde   :  { %1056 = vmatpush.bf16.msrb.mxu3 %v1472_v41 }
  0xdf   :  { %1027 = vmatpush.bf16.msrb.mxu1 %v1476_v31 }
  0xe3   :  { %1028 = vmatpush.bf16.msrb.mxu1 %v1468_v39 }
 0x131   :  { %v700_v18 = vpop.f32.mrf.mxu0 }
 0x132   :  { %v714_v27 = vpop.f32.mrf.mxu1  ;;  %v701_v42 = vadd.f32 %v700_v18, %v367_v34  ;;  %v844_v18 = vperm.slane %v841_v14, 1 }
 0x134   :  { %v715_v46 = vadd.f32 %v714_v27, %v701_v42 }
 0x139   :  { %v702_v35 = vpop.f32.mrf.mxu0 }
 0x13a   :  { %v716_v45 = vpop.f32.mrf.mxu1  ;;  %v703_v47 = vadd.f32 %v702_v35, %v367_v34  ;;  %v1071_v35 = vlaneseq }
 0x13c   :  { %v717_v50 = vadd.f32 %v716_v45, %v703_v47  ;;  %v1072_v37 = vand.u32 127, %v1071_v35 }
 0x13e   :  { %v1074_v38 = vadd.s32 4294967288, %v1072_v37 }
 0x141   :  { %v756_v49 = vpop.f32.mrf.mxu0 }
 0x142   :  { %v770_v57 = vpop.f32.mrf.mxu1  ;;  %v757_v60 = vadd.f32 %v756_v49, %v368_v55 }
 0x143   :  { %v728_v43 = vpop.f32.mrf.mxu2  ;;  %v742_v44 = vpop.f32.mrf.mxu3 }
 0x144   :  { %v729_v48 = vadd.f32 %v728_v43, %v715_v46  ;;  %v771_v1 = vadd.f32 %v770_v57, %v757_v60 }
 0x146   :  { %v743_v52 = vadd.f32 %v742_v44, %v729_v48 }
 0x148   :  { %v803_v58 = vmax.f32 %v743_v52, 0.0 }
 0x149   :  { %v758_v62 = vpop.f32.mrf.mxu0 }
 0x14a   :  { %v759_v2 = vadd.f32 %v758_v62, %v368_v55  ;;  %v772_v4 = vpop.f32.mrf.mxu1 }
 0x14b   :  { %v730_v51 = vpop.f32.mrf.mxu2  ;;  %v744_v54 = vpop.f32.mrf.mxu3 }
 0x14c   :  { %v731_v53 = vadd.f32 %v730_v51, %v717_v50  ;;  %v773_v5 = vadd.f32 %v772_v4, %v759_v2 }
 0x14e   :  { %v745_v56 = vadd.f32 %v744_v54, %v731_v53 }
 0x150   :  { %v805_v59 = vmax.f32 %v745_v56, 0.0 }
 0x152   :  { %v807_v61 = vpack.c.bf16 %v805_v59, %v803_v58 }
 0x153   :  { %v784_v63 = vpop.f32.mrf.mxu2  ;;  %v798_v0 = vpop.f32.mrf.mxu3 }
 0x154   :  { %1015 = vmatmul.bf16.vlgmr.msrb.gmra.mxu0 %v807_v61  ;;  %1043 = vmatmul.bf16.vlgmr.msrb.gmra.mxu2 %v807_v61  ;;  %v785_v3 = vadd.f32 %v784_v63, %v771_v1 }
 0x156   :  { %v799_v7 = vadd.f32 %v798_v0, %v785_v3 }
 0x158   :  { %v804_v11 = vmax.f32 %v799_v7, 0.0 }
 0x15b   :  { %v786_v6 = vpop.f32.mrf.mxu2  ;;  %v800_v9 = vpop.f32.mrf.mxu3 }
 0x15c   :  { %v787_v8 = vadd.f32 %v786_v6, %v773_v5 }
 0x15e   :  { %v801_v10 = vadd.f32 %v800_v9, %v787_v8 }
 0x160   :  { %v806_v12 = vmax.f32 %v801_v10, 0.0 }
 0x162   :  { %v808_v13 = vpack.c.bf16 %v806_v12, %v804_v11 }
 0x164   :  { %1029 = vmatmul.bf16.vlgmr.msrb.gmra.mxu1 %v808_v13  ;;  %1057 = vmatmul.bf16.vlgmr.msrb.gmra.mxu3 %v808_v13 }
 0x1d1   :  { %v1016_v15 = vpop.f32.mrf.mxu0 }
 0x1d2   :  { %v1017_v20 = vadd.f32 %v1016_v15, %v843_v17 }
 0x1d7   :  { %v1044_v16 = vpop.f32.mrf.mxu2 }
 0x1d8   :  { %v1045_v21 = vadd.f32 %v1044_v16, %v844_v18 }
 0x1d9   :  { %v1018_v26 = vpop.f32.mrf.mxu0 }
 0x1da   :  { %v1019_v29 = vadd.f32 %v1018_v26, %v843_v17 }
 0x1df   :  { %v1046_v27 = vpop.f32.mrf.mxu2 }
 0x1e0   :  { %v1047_v30 = vadd.f32 %v1046_v27, %v844_v18 }
 0x1e1   :  { %v1030_v19 = vpop.f32.mrf.mxu1 }
 0x1e2   :  { %v1031_v23 = vadd.f32 %v1030_v19, %v1017_v20 }
 0x1e7   :  { %v1058_v22 = vpop.f32.mrf.mxu3 }
 0x1e8   :  { %v1059_v24 = vadd.f32 %v1058_v22, %v1045_v21 }
 0x1e9   :  { %v1032_v28 = vpop.f32.mrf.mxu1 }
 0x1ea   :  { %v1063_v25 = vmul.f32 %v1059_v24, %v1031_v23  ;;  %v1033_v32 = vadd.f32 %v1032_v28, %v1019_v29 }
 0x1ec   :  { %1065 = vadd.xlane.f32.xlu0 %v1063_v25 }
 0x1ef   :  { %v1060_v31 = vpop.f32.mrf.mxu3 }
 0x1f0   :  { %v1061_v33 = vadd.f32 %v1060_v31, %v1047_v30 }
 0x1f2   :  { %v1064_v34 = vmul.f32 %v1061_v33, %v1033_v32 }
 0x1f4   :  { %1067 = vadd.xlane.f32.xlu0 %v1064_v34 }
 0x25f   :  { %v1066_v36 = vpop.xlane.xlu0 %1065 }
 0x260   :  { %v1073_v40 = vperm.slane %v1066_v36, %v1072_v37 }
 0x267   :  { %v1068_v39 = vpop.xlane.xlu0 %1067 }
 0x268   :  { %v1075_v41 = vperm.slane %v1068_v39, %v1074_v38 }
 0x26a   :  { %v1077_v42 = vsel %vm1076_vm2, %v1075_v41, %v1073_v40 }
 0x26b   :  { %1080 = vst.msk [vmem:[#allocation14] sm:$0x1] %vm1079_vm3, %v1077_v42 }
 0x26c   :  { %1091 = dma.vmem_to_hbm [thread:$0]  %s1087_s18, 16, %s1089_s3, [#allocation4]  }
 0x26d   :  { %1845 = dma.done.wait [#allocation4], 16  }
 0x26e   :  { %1846 = vsyncadd [#allocation4], 4294967280 }
 0x26f   :  { %1096 = vsyncpa [#allocation3], 1 }
 0x270   :  { %1097 = vsyncpa [#allocation6], 1 }
 0x271   :  { %1098 = vsyncpa [#allocation9], 1 }
 0x272   :  { %1099 = vsyncpa [#allocation12], 1 }
 0x273   :  { %1100 = vsyncpa [#allocation4], 1 }

</bundles_post_ra>
